<compile_context>
chip_gen: v5e
topology: v5e:2x2
jax: 0.10.0
libtpu: 0.0.40
codegen_flags: <defaults>
</compile_context>

<pallas_src>
import functools

import jax
import jax.numpy as jnp
from jax.experimental import pallas as pl
from jax.experimental.pallas import tpu as pltpu


# --------------------------------- kernel ------------------------------------

def cnn_layer_norm_kernel(x_ref, gamma_ref, beta_ref, out_ref, *, eps, inv_h):
    # x_ref: (r_blk, H, w_tile)   gamma_ref/beta_ref: (1, H, 1) or (1, H, w_tile)
    xf = x_ref[...].astype(jnp.float32)

    # Two-pass, numerically stable statistics (block is VMEM resident, so the
    # second pass over vregs is free filler under the DMA).
    mean = jnp.sum(xf, axis=1, keepdims=True) * inv_h            # (r_blk, 1, w_tile)
    centered = xf - mean
    var = jnp.sum(centered * centered, axis=1, keepdims=True) * inv_h
    inv_std = jax.lax.rsqrt(var + eps)                           # EUP, not a divide

    out_ref[...] = (centered * inv_std * gamma_ref[...] + beta_ref[...]).astype(
        out_ref.dtype)


# ------------------------------ tiling helpers --------------------------------

def _vmem_capacity_bytes():
    try:
        cap = int(pltpu.get_tpu_info().vmem_capacity_bytes)
        if cap > 0:
            return cap
    except Exception:
        pass
    return 64 << 20  # conservative (v7x-sized) fallback


def _largest_divisor_leq(n, cap):
    cap = max(1, min(n, int(cap)))
    for d in range(cap, 0, -1):
        if n % d == 0:
            return d
    return 1


def _largest_128_multiple_divisor_leq(w, cap):
    cap = (min(w, int(cap)) // 128) * 128
    d = cap
    while d >= 128:
        if w % d == 0:
            return d
        d -= 128
    return 128 if w % 128 == 0 else w


def _choose_tiling(N, H, W, max_block_elems):
    """Returns (r_blk, w_tile)."""
    row_elems = H * W
    if row_elems <= max_block_elems:
        # Full-time rows: each (b, c) slab is one contiguous DMA. Fold rows to
        # fill the byte budget.
        w_tile = W
        r_blk = _largest_divisor_leq(N, max(1, max_block_elems // row_elems))
        # Guarantee >= 2 parallel grid steps for v7x's two TensorCores.
        if N >= 2 and N // r_blk < 2:
            r_blk = _largest_divisor_leq(N, max(1, N // 2))
    else:
        r_blk = 1
        if W % 128 == 0:
            w_cap = max(128, (max_block_elems // max(H, 1)) // 128 * 128)
            w_tile = _largest_128_multiple_divisor_leq(W, w_cap)
        else:
            # Full-dim fallback (see TODO at the top of the file).
            w_tile = W
    return r_blk, w_tile


# -------------------------------- wrapper ------------------------------------

def cnn_layer_norm_forward(x, gamma, beta, *, eps=1e-5):
    """x: (B, C, n_feats, time).  gamma, beta: (n_feats,)."""
    B, C, H, W = x.shape
    N = B * C
    itemsize = jnp.dtype(x.dtype).itemsize

    # Generation-aware VMEM budget.
    cap = _vmem_capacity_bytes()                 # 128 MiB (v5e/v6e) / 64 MiB (v7x)
    vmem_limit = int(0.75 * cap)
    # Live bytes per block element: double-buffered in+out at native dtype
    # (4*itemsize) plus ~two f32 temporaries inside the kernel (~8 B).
    bytes_per_elem = 4 * itemsize + 8
    max_block_elems = max((vmem_limit - (2 << 20)) // bytes_per_elem, H * 128)

    r_blk, w_tile = _choose_tiling(N, H, W, max_block_elems)
    n_rows = N // r_blk
    n_w = W // w_tile

    # Fold (B, C) -> N rows; contiguous reshape, no data movement.
    x3 = x.reshape(N, H, W)

    # Params: pre-broadcast along lanes when cheap (<= 2 MiB), else single-lane
    # block and let the kernel broadcast (free under DMA).
    g1 = gamma.astype(jnp.float32).reshape(1, H, 1)
    b1 = beta.astype(jnp.float32).reshape(1, H, 1)
    if H * w_tile * 4 <= (2 << 20):
        g = jnp.broadcast_to(g1, (1, H, w_tile))
        b = jnp.broadcast_to(b1, (1, H, w_tile))
    else:
        g, b = g1, b1
    p_shape = g.shape

    kern = functools.partial(cnn_layer_norm_kernel, eps=float(eps), inv_h=1.0 / H)

    x_spec = pl.BlockSpec((r_blk, H, w_tile), lambda ri, wi: (ri, 0, wi))
    p_spec = pl.BlockSpec(p_shape, lambda ri, wi: (0, 0, 0))
    o_spec = pl.BlockSpec((r_blk, H, w_tile), lambda ri, wi: (ri, 0, wi))

    out3 = pl.pallas_call(
        kern,
        out_shape=jax.ShapeDtypeStruct((N, H, W), x.dtype),
        grid_spec=pltpu.PrefetchScalarGridSpec(
            num_scalar_prefetch=0,
            grid=(n_rows, n_w),
            in_specs=[x_spec, p_spec, p_spec],
            out_specs=o_spec,
        ),
        compiler_params=pltpu.CompilerParams(
            dimension_semantics=("parallel", "parallel"),
            vmem_limit_bytes=vmem_limit,
        ),
    )(x3, g, b)

    return out3.reshape(B, C, H, W)


# ------------------------- plain-JAX reference (checks) ----------------------

def reference_forward(x, gamma, beta, eps=1e-5):
    xf = x.astype(jnp.float32)
    mean = xf.mean(axis=2, keepdims=True)
    var = ((xf - mean) ** 2).mean(axis=2, keepdims=True)
    xn = (xf - mean) / jnp.sqrt(var + eps)
    out = xn * gamma.astype(jnp.float32)[None, None, :, None] \
          + beta.astype(jnp.float32)[None, None, :, None]
    return out.astype(x.dtype)


def _check(x, gamma, beta, rtol=1e-4, atol=1e-4):
    out = jax.block_until_ready(cnn_layer_norm_forward(x, gamma, beta))
    ref = reference_forward(x, gamma, beta)
    assert out.shape == ref.shape == x.shape
    if not bool(jnp.allclose(out.astype(jnp.float32), ref.astype(jnp.float32),
                             rtol=rtol, atol=atol)):
        err = float(jnp.max(jnp.abs(out.astype(jnp.float32) - ref.astype(jnp.float32))))
        raise AssertionError(f"Pallas output mismatch vs reference, max abs err = {err}")


# ---------------------------------- main --------------------------------------

if __name__ == "__main__":
    B, C, n_feats, T = 2, 4, 16, 16     # (batch, channels, H=n_feats, W=time)

    key = jax.random.PRNGKey(0)
    k_x, k_g, k_b, k_x2, k_x3 = jax.random.split(key, 5)
    x = jax.random.normal(k_x, (B, C, n_feats, T), jnp.float32)
    gamma = 1.0 + 0.1 * jax.random.normal(k_g, (n_feats,), jnp.float32)
    beta = 0.1 * jax.random.normal(k_b, (n_feats,), jnp.float32)

    # Small shape (full-time blocks, W < 128, multiple rows folded per block).
    _check(x, gamma, beta)

    # Lane-dense full-time path, offset-heavy input (stresses variance stability).
    x_long = 5.0 + jax.random.normal(k_x2, (B, C, n_feats, 384), jnp.float32)
    _check(x_long, gamma, beta)

    # bf16 path (itemsize-aware budgeting, f32 compute inside the kernel).
    x_bf16 = jax.random.normal(k_x3, (B, C, n_feats, 256), jnp.bfloat16)
    _check(x_bf16, gamma, beta, rtol=3e-2, atol=3e-2)

    print("KERNEL_OK")
</pallas_src>

<mosaic_0001>
module attributes {stable_mosaic.version = 11 : i64} {
  func.func @cnn_layer_norm_kernel(%arg0: i32, %arg1: i32, %arg2: memref<4x16x16xf32, #tpu.memory_space<vmem>>, %arg3: memref<1x16x16xf32, #tpu.memory_space<vmem>>, %arg4: memref<1x16x16xf32, #tpu.memory_space<vmem>>, %arg5: memref<4x16x16xf32, #tpu.memory_space<vmem>>) attributes {dimension_semantics = [#tpu.dimension_semantics<parallel>, #tpu.dimension_semantics<parallel>], iteration_bounds = array<i64: 2, 1>, scalar_prefetch = 0 : i64, scratch_operands = 0 : i64, tpu.core_type = #tpu.core_type<tc>, window_params = [{transform_indices = @transform_0, window_bounds = array<i64: 4, 16, 16>}, {pipeline_mode = #tpu.pipeline_mode<synchronous>, transform_indices = @transform_1, window_bounds = array<i64: 1, 16, 16>}, {pipeline_mode = #tpu.pipeline_mode<synchronous>, transform_indices = @transform_2, window_bounds = array<i64: 1, 16, 16>}, {transform_indices = @transform_3, window_bounds = array<i64: 4, 16, 16>}]} {
    %c0 = arith.constant 0 : index
    %c0_0 = arith.constant 0 : index
    %c0_1 = arith.constant 0 : index
    %0 = vector.load %arg2[%c0, %c0_0, %c0_1] : memref<4x16x16xf32, #tpu.memory_space<vmem>>, vector<4x16x16xf32>
    %cst = arith.constant dense<0.000000e+00> : vector<4x16xf32>
    %1 = vector.multi_reduction <add>, %0, %cst [1] : vector<4x16x16xf32> to vector<4x16xf32>
    %2 = vector.shape_cast %1 : vector<4x16xf32> to vector<4x1x16xf32>
    %cst_2 = arith.constant 6.250000e-02 : f32
    %3 = vector.broadcast %cst_2 : f32 to vector<4x1x16xf32>
    %4 = arith.mulf %2, %3 : vector<4x1x16xf32>
    %5 = vector.broadcast %4 : vector<4x1x16xf32> to vector<4x16x16xf32>
    %6 = arith.subf %0, %5 : vector<4x16x16xf32>
    %7 = arith.mulf %6, %6 : vector<4x16x16xf32>
    %cst_3 = arith.constant dense<0.000000e+00> : vector<4x16xf32>
    %8 = vector.multi_reduction <add>, %7, %cst_3 [1] : vector<4x16x16xf32> to vector<4x16xf32>
    %9 = vector.shape_cast %8 : vector<4x16xf32> to vector<4x1x16xf32>
    %cst_4 = arith.constant 6.250000e-02 : f32
    %10 = vector.broadcast %cst_4 : f32 to vector<4x1x16xf32>
    %11 = arith.mulf %9, %10 : vector<4x1x16xf32>
    %cst_5 = arith.constant 9.99999974E-6 : f32
    %12 = vector.broadcast %cst_5 : f32 to vector<4x1x16xf32>
    %13 = arith.addf %11, %12 : vector<4x1x16xf32>
    %14 = math.rsqrt %13 : vector<4x1x16xf32>
    %15 = vector.broadcast %14 : vector<4x1x16xf32> to vector<4x16x16xf32>
    %16 = arith.mulf %6, %15 : vector<4x16x16xf32>
    %c0_6 = arith.constant 0 : index
    %c0_7 = arith.constant 0 : index
    %c0_8 = arith.constant 0 : index
    %17 = vector.load %arg3[%c0_6, %c0_7, %c0_8] : memref<1x16x16xf32, #tpu.memory_space<vmem>>, vector<1x16x16xf32>
    %18 = vector.broadcast %17 : vector<1x16x16xf32> to vector<4x16x16xf32>
    %19 = arith.mulf %16, %18 : vector<4x16x16xf32>
    %c0_9 = arith.constant 0 : index
    %c0_10 = arith.constant 0 : index
    %c0_11 = arith.constant 0 : index
    %20 = vector.load %arg4[%c0_9, %c0_10, %c0_11] : memref<1x16x16xf32, #tpu.memory_space<vmem>>, vector<1x16x16xf32>
    %21 = vector.broadcast %20 : vector<1x16x16xf32> to vector<4x16x16xf32>
    %22 = arith.addf %19, %21 : vector<4x16x16xf32>
    %c0_12 = arith.constant 0 : index
    %c0_13 = arith.constant 0 : index
    %c0_14 = arith.constant 0 : index
    %23 = vector.load %arg5[%c0_12, %c0_13, %c0_14] : memref<4x16x16xf32, #tpu.memory_space<vmem>>, vector<4x16x16xf32>
    tpu.vector_store %arg5[%c0_12, %c0_13, %c0_14], %22 {strides = array<i32>} : memref<4x16x16xf32, #tpu.memory_space<vmem>>, vector<4x16x16xf32>,
    return
  }
  func.func @transform_0(%arg0: i32, %arg1: i32) -> (i32, i32, i32) {
    %c0_i32 = arith.constant 0 : i32
    %c0_i32_0 = arith.constant 0 : i32
    return %arg0, %c0_i32, %arg1 : i32, i32, i32
  }
  func.func @transform_1(%arg0: i32, %arg1: i32) -> (i32, i32, i32) {
    %c0_i32 = arith.constant 0 : i32
    %c0_i32_0 = arith.constant 0 : i32
    %c0_i32_1 = arith.constant 0 : i32
    %c0_i32_2 = arith.constant 0 : i32
    return %c0_i32, %c0_i32_0, %c0_i32_1 : i32, i32, i32
  }
  func.func @transform_2(%arg0: i32, %arg1: i32) -> (i32, i32, i32) {
    %c0_i32 = arith.constant 0 : i32
    %c0_i32_0 = arith.constant 0 : i32
    %c0_i32_1 = arith.constant 0 : i32
    %c0_i32_2 = arith.constant 0 : i32
    return %c0_i32, %c0_i32_0, %c0_i32_1 : i32, i32, i32
  }
  func.func @transform_3(%arg0: i32, %arg1: i32) -> (i32, i32, i32) {
    %c0_i32 = arith.constant 0 : i32
    %c0_i32_0 = arith.constant 0 : i32
    return %arg0, %c0_i32, %arg1 : i32, i32, i32
  }
}

</mosaic_0001>

<bundles_post_ra>
// kernel: tpu_custom_call.1
= control target key start
LH: loop header
LB: loop body
LE: loop exit
PB: predicated region body
PF: predicated region fallthrough
CT: control target
= control target key end

     0   :  { %8 = vsyncpa [#allocation3], 0  ;;  %s1098_s0 = inlined_call_operand.hbm [shape: f32[8,16,16], index: 0, kind: input, shape index: {}]   ;;  %s1099_s1 = inlined_call_operand.hbm [shape: f32[1,16,16], index: 1, kind: input, shape index: {}]   ;;  %s1100_s2 = inlined_call_operand.hbm [shape: f32[1,16,16], index: 2, kind: input, shape index: {}]   ;;  %s1101_s3 = inlined_call_operand.hbm [shape: f32[8,16,16], index: 3, kind: output, shape index: {}]  }
   0x1   :  { %10 = vsyncpa [#allocation3 + $0x1], 0 }
   0x2   :  { %11 = vsyncpa [#allocation6], 0 }
   0x3   :  { %12 = vsyncpa [#allocation4], 0 }
   0x4   :  { %14 = vsyncpa [#allocation4 + $0x1], 0  ;;  %s875_s12 = smov 0   ;;  %s877_s13 = smov 0  }
   0x5   :  { %s879_s14 = smov 0   ;;  %s881_s15 = smov 0  }
   0x6   :  { %s883_s16 = smov 0   ;;  %s885_s17 = smov 0  }
   0x7 LB: > { %s551_s18 = sadd.s32 4294967295, %s847_s17   ;;  %s552_s19 = sadd.s32 4294967294, %s847_s17   ;;  %s847_s17 = sphi %s885_s17, %s20_s17   ;;  %s843_s16 = sphi %s883_s16, %s1111_s16   ;;  %s839_s15 = sphi %s881_s15, %s1110_s15   ;;  %s835_s14 = sphi %s879_s14, %s1109_s14   ;;  %s831_s13 = sphi %s877_s13, %s1108_s13   ;;  %s827_s12 = sphi %s875_s12, %s1107_s12  }
   0x8   : > { %p54_p0 = scmp.ne.s32.totalorder %s831_s13, %s827_s12  ;;  %p911_p1 = scmp.eq.s32.totalorder %s551_s18, 0 }
   0x9   : > { %p128_p2 = scmp.eq.s32.totalorder %s552_s19, 1  ;;  %p553_p4 = scmp.ge.s32.totalorder %s847_s17, 1 }
   0xa   : > { %p917_p3 = por %p911_p1, %p54_p0  ;;  %p135_p6 = scmp.lt.s32.totalorder %s847_s17, 3 }
   0xb   : > { %p922_p5 = por %p128_p2, %p54_p0  ;;  %s146_s25 = sshll.u32 %s1099_s1, 4  ;;  %s147_s25 = int_to_ptr.hbm [resolvable:$true] %s146_s25 }
   0xc   : > { %p930_p7 = pnand %p553_p4, %p135_p6  ;;  %s849_s27 = smov [#allocation5]  }
   0xd   : > { %s148_s28 = sshll.u32 %s849_s27, 4  ;;  %p556_p10 = scmp.ge.s32.totalorder %s847_s17, 2  ;;  %s149_s28 = int_to_ptr.vmem [resolvable:$true] %s148_s28 }
   0xe   : > { %p588_p8 = pneg %p930_p7  ;;  %s160_s4 = sshll.u32 %s1100_s2, 4  ;;  %s161_s4 = int_to_ptr.hbm [resolvable:$true] %s160_s4 }
   0xf   : > { %s850_s5 = smov 128   ;;  %s851_s6 = smov 8  }
  0x10   : > { %p589_p9 = pnand %p588_p8, %p911_p1  ;;  %s852_s7 = smov [#allocation7]  }
  0x11   : > { %s162_s8 = sshll.u32 %s852_s7, 4  ;;  %p122_p11 = scmp.eq.s32.totalorder %s551_s18, 1  ;;  %s163_s8 = int_to_ptr.vmem [resolvable:$true] %s162_s8 }
  0x12   : > { %591 = dma.hbm_to_vmem [thread:$0]  (!%p589_p9), %s147_s25, 256, %s149_s28, [#allocation6], %s850_s5, %s850_s5, %s851_s6  }
  0x13   : > { %594 = dma.hbm_to_vmem [thread:$0]  (!%p589_p9), %s161_s4, 256, %s163_s8, [#allocation6], %s850_s5, %s850_s5, %s851_s6  }
  0x14   : > { %s32_s9 = sadd.s32 1, %s843_s16  ;;  %s41_s10 = sadd.s32 1, %s835_s14 }
  0x15   : > { %p34_p12 = scmp.ge.s32.totalorder %s32_s9, 2  ;;  %p48_p13 = scmp.ne.s32.totalorder %s835_s14, %s831_s13 }
  0x16   : > { %p49_p0 = scmp.eq.s32.totalorder %s847_s17, 0  ;;  %p605_p4 = scmp.lt.s32.totalorder %s847_s17, 2 }
  0x17   : > { %s1113_s9 = smov (%p34_p12, %s32_s9), 0  ;;  %p957_p2 = por %p122_p11, %p48_p13 }
  0x18   : > { %s36_s19 = ssub.s32 %s843_s16, %s1113_s9  ;;  %s176_s23 = sand.u32 1, %s835_s14  }
  0x19   : > { %p39_p6 = scmp.eq.s32.totalorder %s36_s19, 0  ;;  %p50_p8 = por %p49_p0, %p48_p13 }
  0x1a   : > { %s557_s24 = sshll.u32 %s176_s23, 6  ;;  %s573_s18 = sshll.u32 %s843_s16, 6 }
  0x1b   : > { %s967_s25 = scalar_select %p39_p6, %s835_s14, %s41_s10  }
  0x1c   : > { %s187_s29 = scalar_lea.hbm %s1098_s0, %s573_s18  ;;  %s180_s4 = scalar_lea.vmem [#allocation2], %s557_s24 }
  0x1d   : > { %s188_s30 = sshll.u32 %s187_s29, 4  ;;  %s190_s7 = sshll.u32 %s180_s4, 4  ;;  %s189_s30 = int_to_ptr.hbm [resolvable:$true] %s188_s30  ;;  %s191_s7 = int_to_ptr.vmem [resolvable:$true] %s190_s7 }
  0x1e   : > { %p596_p9 = pnand %p605_p4, %p50_p8  ;;  %s177_s8 = scalar_lea.sflag [#allocation3], %s176_s23 }
  0x1f   : > { %202 = sbr.rel (%p930_p7) target bundleno = 115 (0x73), region = 32  ;;  %s980_s10 = sand.u32 (!%p930_p7), 1, %s831_s13  }
  0x20   : > { %598 = dma.hbm_to_vmem [thread:$0]  (!%p596_p9), %s189_s30, 1024, %s191_s7, %s177_s8, %s850_s5, %s850_s5, %s851_s6  }
  0x21   : > { %s562_s19 = sshll.u32 (!%p930_p7), %s980_s10, 6  ;;  %s205_s24 = scalar_lea.sflag (!%p930_p7), [#allocation3], %s980_s10 }
  0x22   : > { %s208_s18 = scalar_lea.vmem (!%p930_p7), [#allocation2], %s562_s19 }
  0x24   : > { %814 = dma.done.wait (%p917_p3), %s205_s24, 1024  }
  0x25   : > { %816 = vsyncadd (%p917_p3), %s205_s24, 4294966272 }
  0x26   : > { %818 = dma.done.wait (%p911_p1), [#allocation6], 512  }
  0x27   : > { %820 = vsyncadd (%p911_p1), [#allocation6], 4294966784  ;;  %vm252_vm0 = vcmask 130048   ;;  %v244_v0 = vld [vmem:[%s208_s18] sm:$0xff]  ;;  %v245_v1 = vld [vmem:[%s208_s18 + $0x8] sm:$0xff]  ;;  %s575_s20 = sshll.u32 %s839_s15, 6 }
  0x28   : > { %v246_v2 = vld [vmem:[%s208_s18 + $0x10] sm:$0xff]  ;;  %v253_v3 = vsel %vm252_vm0, %v244_v0, 0.0  ;;  %v254_v4 = vsel %vm252_vm0, %v245_v1, 0.0  ;;  %v247_v5 = vld [vmem:[%s208_s18 + $0x18] sm:$0xff]  ;;  %v248_v7 = vld [vmem:[%s208_s18 + $0x20] sm:$0xff]  ;;  %s443_s5 = scalar_lea.hbm %s1101_s3, %s575_s20  ;;  %s241_s6 = scalar_lea.vmem [#allocation8], %s562_s19 }
  0x29   : > { %v262_v6 = vsel %vm252_vm0, %v246_v2, 0.0  ;;  %v249_v8 = vld [vmem:[%s208_s18 + $0x28] sm:$0xff]  ;;  %v255_v9 = vadd.f32 %v254_v4, %v253_v3  ;;  %v263_v10 = vsel %vm252_vm0, %v247_v5, 0.0  ;;  %v271_v11 = vsel %vm252_vm0, %v248_v7, 0.0  ;;  %v250_v13 = vld [vmem:[%s208_s18 + $0x30] sm:$0xff]  ;;  %v251_v14 = vld [vmem:[%s208_s18 + $0x38] sm:$0xff] }
  0x2a   : > { %v272_v12 = vsel %vm252_vm0, %v249_v8, 0.0  ;;  %v264_v15 = vadd.f32 %v263_v10, %v262_v6  ;;  %v280_v17 = vsel %vm252_vm0, %v250_v13, 0.0  ;;  %v281_v18 = vsel %vm252_vm0, %v251_v14, 0.0  ;;  %s444_s15 = sshll.u32 %s241_s6, 4  ;;  %s446_s23 = sshll.u32 %s443_s5, 4  ;;  %s445_s15 = int_to_ptr.vmem [resolvable:$true] %s444_s15  ;;  %s447_s23 = int_to_ptr.hbm [resolvable:$true] %s446_s23 }
  0x2b   : > { %v273_v16 = vadd.f32 %v272_v12, %v271_v11  ;;  %v256_v19 = vrot.slane %v255_v9, 4  ;;  %v282_v20 = vadd.f32 %v281_v18, %v280_v17  ;;  %s430_s27 = scalar_lea.sflag [#allocation4], %s980_s10  ;;  %s775_s28 = sshra.s32 %s447_s23, 4  ;;  %s776_s28 = int_to_ptr.hbm [resolvable:$true] %s775_s28 }
  0x2c   : > { %v265_v21 = vrot.slane %v264_v15, 4  ;;  %s777_s29 = scalar_lea.hbm %s776_s28, 64  ;;  %s781_s7 = scalar_lea.hbm %s1101_s3, 128 }
  0x2d   : > { %v274_v22 = vrot.slane %v273_v16, 4  ;;  %v257_v23 = vadd.f32 %v256_v19, %v255_v9  ;;  %v283_v24 = vrot.slane %v282_v20, 4  ;;  %p778_p1 = scmp.ne.s32.totalorder %s776_s28, %s777_s29  ;;  %p782_p11 = scmp.lt.s32.totalorder %s776_s28, %s1101_s3 }
  0x2e   : > { %v266_v25 = vadd.f32 %v265_v21, %v264_v15  ;;  %p783_p12 = scmp.lt.s32.totalorder %s781_s7, %s777_s29 }
  0x2f   : > { %v275_v26 = vadd.f32 %v274_v22, %v273_v16  ;;  %v258_v27 = vrot.slane %v257_v23, 2  ;;  %v284_v28 = vadd.f32 %v283_v24, %v282_v20  ;;  %p779_p3 = pnand %p778_p1, %p957_p2 }
  0x30   : > { %v267_v29 = vrot.slane %v266_v25, 2  ;;  %p784_p13 = por %p783_p12, %p782_p11 }
  0x31   : > { %v276_v30 = vrot.slane %v275_v26, 2  ;;  %v259_v31 = vadd.f32 %v258_v27, %v257_v23  ;;  %v285_v32 = vrot.slane %v284_v28, 2  ;;  %p780_p7 = pneg %p779_p3 }
  0x32   : > { %v268_v33 = vadd.f32 %v267_v29, %v266_v25 }
  0x33   : > { %v277_v34 = vadd.f32 %v276_v30, %v275_v26  ;;  %v260_v35 = vrot.slane %v259_v31, 1  ;;  %v286_v36 = vadd.f32 %v285_v32, %v284_v28  ;;  %p785_p0 = pnand %p784_p13, %p780_p7 }
  0x34   : > { %v269_v37 = vrot.slane %v268_v33, 1 }
  0x35   : > { %v278_v38 = vrot.slane %v277_v34, 1  ;;  %v261_v39 = vadd.f32 %v260_v35, %v259_v31  ;;  %v287_v40 = vrot.slane %v286_v36, 1 }
  0x36   : > { %v270_v41 = vadd.f32 %v269_v37, %v268_v33 }
  0x37   : > { %v279_v42 = vadd.f32 %v278_v38, %v277_v34  ;;  %v289_v43 = vmul.f32 0.0625, %v261_v39  ;;  %v288_v44 = vadd.f32 %v287_v40, %v286_v36 }
  0x38   : > { %v290_v45 = vmul.f32 0.0625, %v270_v41 }
  0x39   : > { %v291_v46 = vmul.f32 0.0625, %v279_v42  ;;  %v1002_v47 = vsub.f32 %v244_v0, %v289_v43  ;;  %v1004_v48 = vsub.f32 %v245_v1, %v289_v43  ;;  %v292_v49 = vmul.f32 0.0625, %v288_v44 }
  0x3a   : > { %v1006_v50 = vsub.f32 %v246_v2, %v290_v45  ;;  %v1008_v51 = vsub.f32 %v247_v5, %v290_v45 }
  0x3b   : > { %v1010_v52 = vsub.f32 %v248_v7, %v291_v46  ;;  %v1012_v53 = vsub.f32 %v249_v8, %v291_v46  ;;  %v301_v54 = vmul.f32 %v1002_v47, %v1002_v47  ;;  %v302_v55 = vmul.f32 %v1004_v48, %v1004_v48 }
  0x3c   : > { %v1018_v56 = vsub.f32 %v250_v13, %v292_v49  ;;  %v1020_v57 = vsub.f32 %v251_v14, %v292_v49  ;;  %v303_v58 = vmul.f32 %v1006_v50, %v1006_v50  ;;  %v304_v59 = vmul.f32 %v1008_v51, %v1008_v51 }
  0x3d   : > { %v305_v60 = vmul.f32 %v1010_v52, %v1010_v52  ;;  %v306_v61 = vmul.f32 %v1012_v53, %v1012_v53  ;;  %v309_v62 = vsel %vm252_vm0, %v301_v54, 0.0  ;;  %v310_v63 = vsel %vm252_vm0, %v302_v55, 0.0 }
  0x3e   : > { %v307_v0 = vmul.f32 %v1018_v56, %v1018_v56  ;;  %v308_v1 = vmul.f32 %v1020_v57, %v1020_v57  ;;  %v311_v2 = vadd.f32 %v310_v63, %v309_v62  ;;  %v318_v3 = vsel %vm252_vm0, %v303_v58, 0.0 }
  0x3f   : > { %v319_v4 = vsel %vm252_vm0, %v304_v59, 0.0  ;;  %v327_v5 = vsel %vm252_vm0, %v305_v60, 0.0  ;;  %v328_v7 = vsel %vm252_vm0, %v306_v61, 0.0 }
  0x40   : > { %v320_v6 = vadd.f32 %v319_v4, %v318_v3  ;;  %v336_v8 = vsel %vm252_vm0, %v307_v0, 0.0  ;;  %v337_v9 = vsel %vm252_vm0, %v308_v1, 0.0  ;;  %v312_v10 = vrot.slane %v311_v2, 4 }
  0x41   : > { %v329_v11 = vadd.f32 %v328_v7, %v327_v5  ;;  %v338_v12 = vadd.f32 %v337_v9, %v336_v8 }
  0x42   : > { %v321_v13 = vrot.slane %v320_v6, 4  ;;  %v313_v14 = vadd.f32 %v312_v10, %v311_v2 }
  0x43   : > { %v330_v15 = vrot.slane %v329_v11, 4  ;;  %v339_v16 = vrot.slane %v338_v12, 4 }
  0x44   : > { %v322_v17 = vadd.f32 %v321_v13, %v320_v6  ;;  %v314_v18 = vrot.slane %v313_v14, 2 }
  0x45   : > { %v331_v19 = vadd.f32 %v330_v15, %v329_v11  ;;  %v340_v20 = vadd.f32 %v339_v16, %v338_v12  ;;  %v401_v11 = vld [vmem:[#allocation5] sm:$0xff]  ;;  %v402_v12 = vld [vmem:[#allocation5 + $0x8] sm:$0xff] }
  0x46   : > { %v323_v21 = vrot.slane %v322_v17, 2  ;;  %v315_v22 = vadd.f32 %v314_v18, %v313_v14  ;;  %v411_v18 = vld [vmem:[#allocation7] sm:$0xff] }
  0x47   : > { %v332_v23 = vrot.slane %v331_v19, 2  ;;  %v341_v24 = vrot.slane %v340_v20, 2 }
  0x48   : > { %v324_v25 = vadd.f32 %v323_v21, %v322_v17  ;;  %v316_v26 = vrot.slane %v315_v22, 1 }
  0x49   : > { %v333_v27 = vadd.f32 %v332_v23, %v331_v19  ;;  %v342_v28 = vadd.f32 %v341_v24, %v340_v20  ;;  %v412_v19 = vld [vmem:[#allocation7 + $0x8] sm:$0xff] }
  0x4a   : > { %v325_v29 = vrot.slane %v324_v25, 1  ;;  %v317_v30 = vadd.f32 %v316_v26, %v315_v22 }
  0x4b   : > { %v334_v31 = vrot.slane %v333_v27, 1  ;;  %v343_v32 = vrot.slane %v342_v28, 1 }
  0x4c   : > { %v326_v33 = vadd.f32 %v325_v29, %v324_v25  ;;  %v345_v34 = vmul.f32 0.0625, %v317_v30 }
  0x4d   : > { %v335_v35 = vadd.f32 %v334_v31, %v333_v27  ;;  %v344_v36 = vadd.f32 %v343_v32, %v342_v28 }
  0x4e   : > { %v346_v37 = vmul.f32 0.0625, %v326_v33  ;;  %v349_v38 = vadd.f32 1e-05, %v345_v34 }
  0x4f   : > { %v347_v39 = vmul.f32 0.0625, %v335_v35  ;;  %v348_v40 = vmul.f32 0.0625, %v344_v36 }
  0x50   : > { %v350_v41 = vadd.f32 1e-05, %v346_v37  ;;  %663 = vrsqrt.f32 %v349_v38  ;;  %vm359_vm1 = vweird.f32 %v349_v38 }
  0x51   : > { %v351_v42 = vadd.f32 1e-05, %v347_v39  ;;  %v352_v43 = vadd.f32 1e-05, %v348_v40 }
  0x52   : > { %665 = vrsqrt.f32 %v350_v41  ;;  %vm369_vm3 = vweird.f32 %v350_v41 }
  0x53   : > { %667 = vrsqrt.f32 %v351_v42  ;;  %vm379_vm5 = vweird.f32 %v351_v42  ;;  %vm389_vm9 = vweird.f32 %v352_v43 }
  0x54   : > { %669 = vrsqrt.f32 %v352_v43 }
  0x56   : > { %v664_v44 = vpop.eup %663 }
  0x57   : > { %v354_v46 = vmul.f32 %v664_v44, %v349_v38  ;;  %vm360_vm2 = vweird.f32 %v664_v44 }
  0x58   : > { %v666_v45 = vpop.eup %665  ;;  %vm361_vm7 = vmor %vm359_vm1, %vm360_vm2 }
  0x59   : > { %v668_v49 = vpop.eup %667  ;;  %v364_v54 = vmul.f32 %v666_v45, %v350_v41  ;;  %v355_v58 = vmul.f32 %v664_v44, %v354_v46  ;;  %vm370_vm4 = vweird.f32 %v666_v45 }
  0x5a   : > { %v670_v55 = vpop.eup %669  ;;  %v374_v59 = vmul.f32 %v668_v49, %v351_v42  ;;  %vm380_vm6 = vweird.f32 %v668_v49  ;;  %vm371_vm8 = vmor %vm369_vm3, %vm370_vm4 }
  0x5b   : > { %v365_v60 = vmul.f32 %v666_v45, %v364_v54  ;;  %v384_v61 = vmul.f32 %v670_v55, %v352_v43  ;;  %v356_v62 = vmul.f32 0.5, %v355_v58  ;;  %vm390_vm10 = vweird.f32 %v670_v55  ;;  %vm381_vm11 = vmor %vm379_vm5, %vm380_vm6 }
  0x5c   : > { %v375_v63 = vmul.f32 %v668_v49, %v374_v59  ;;  %vm391_vm12 = vmor %vm389_vm9, %vm390_vm10 }
  0x5d   : > { %v366_v0 = vmul.f32 0.5, %v365_v60  ;;  %v385_v1 = vmul.f32 %v670_v55, %v384_v61  ;;  %v357_v2 = vsub.f32 1.5, %v356_v62 }
  0x5e   : > { %v376_v3 = vmul.f32 0.5, %v375_v63 }
  0x5f   : > { %v367_v4 = vsub.f32 1.5, %v366_v0  ;;  %v386_v5 = vmul.f32 0.5, %v385_v1  ;;  %v358_v6 = vmul.f32 %v664_v44, %v357_v2 }
  0x60   : > { %v377_v7 = vsub.f32 1.5, %v376_v3 }
  0x61   : > { %v368_v8 = vmul.f32 %v666_v45, %v367_v4  ;;  %v387_v9 = vsub.f32 1.5, %v386_v5  ;;  %v362_v10 = vsel %vm361_vm7, %v664_v44, %v358_v6 }
  0x62   : > { %v378_v13 = vmul.f32 %v668_v49, %v377_v7  ;;  %v393_v14 = vmul.f32 %v362_v10, %v1002_v47  ;;  %v394_v15 = vmul.f32 %v362_v10, %v1004_v48 }
  0x63   : > { %v372_v16 = vsel %vm371_vm8, %v666_v45, %v368_v8  ;;  %v388_v17 = vmul.f32 %v670_v55, %v387_v9 }
  0x64   : > { %v395_v20 = vmul.f32 %v372_v16, %v1006_v50  ;;  %v396_v21 = vmul.f32 %v372_v16, %v1008_v51  ;;  %v382_v22 = vsel %vm381_vm11, %v668_v49, %v378_v13  ;;  %v403_v23 = vmul.f32 %v401_v11, %v393_v14 }
  0x65   : > { %v404_v24 = vmul.f32 %v402_v12, %v394_v15  ;;  %v397_v25 = vmul.f32 %v382_v22, %v1010_v52  ;;  %v398_v26 = vmul.f32 %v382_v22, %v1012_v53  ;;  %v392_v27 = vsel %vm391_vm12, %v670_v55, %v388_v17 }
  0x66   : > { %v405_v47 = vmul.f32 %v401_v11, %v395_v20  ;;  %v406_v48 = vmul.f32 %v402_v12, %v396_v21  ;;  %v413_v28 = vadd.f32 %v411_v18, %v403_v23  ;;  %v399_v51 = vmul.f32 %v392_v27, %v1018_v56 }
  0x67   : > { %v414_v29 = vadd.f32 %v412_v19, %v404_v24  ;;  %v407_v30 = vmul.f32 %v401_v11, %v397_v25  ;;  %v408_v31 = vmul.f32 %v402_v12, %v398_v26  ;;  %v400_v33 = vmul.f32 %v392_v27, %v1020_v57 }
  0x68   : > { %v415_v32 = vadd.f32 %v411_v18, %v405_v47  ;;  %v416_v50 = vadd.f32 %v412_v19, %v406_v48  ;;  %421 = vst.msk [vmem:[%s241_s6] sm:$0xff] %vm252_vm0, %v413_v28  ;;  %v409_v34 = vmul.f32 %v401_v11, %v399_v51 }
  0x69   : > { %v417_v52 = vadd.f32 %v411_v18, %v407_v30  ;;  %422 = vst.msk [vmem:[%s241_s6 + $0x8] sm:$0xff] %vm252_vm0, %v414_v29  ;;  %v418_v53 = vadd.f32 %v412_v19, %v408_v31  ;;  %v410_v35 = vmul.f32 %v402_v12, %v400_v33 }
  0x6a   : > { %423 = vst.msk [vmem:[%s241_s6 + $0x10] sm:$0xff] %vm252_vm0, %v415_v32  ;;  %v419_v56 = vadd.f32 %v411_v18, %v409_v34 }
  0x6b   : > { %424 = vst.msk [vmem:[%s241_s6 + $0x18] sm:$0xff] %vm252_vm0, %v416_v50  ;;  %v420_v57 = vadd.f32 %v412_v19, %v410_v35 }
  0x6c   : > { %425 = vst.msk [vmem:[%s241_s6 + $0x20] sm:$0xff] %vm252_vm0, %v417_v52 }
  0x6d   : > { %426 = vst.msk [vmem:[%s241_s6 + $0x28] sm:$0xff] %vm252_vm0, %v418_v53 }
  0x6e   : > { %427 = vst.msk [vmem:[%s241_s6 + $0x30] sm:$0xff] %vm252_vm0, %v419_v56 }
  0x6f   : > { %428 = vst.msk [vmem:[%s241_s6 + $0x38] sm:$0xff] %vm252_vm0, %v420_v57 }
  0x70   : > { %788 = shalt.err (!%p785_p0)
}
  0x71   : > { %s853_s10 = smov 128   ;;  %s854_s24 = smov 8  }
  0x72   : > { %586 = dma.vmem_to_hbm [thread:$0]  (%p957_p2), %s445_s15, 1024, %s447_s23, %s430_s27, %s853_s10, %s853_s10, %s854_s24  }
  0x73 PF: > { %s461_s18 = sand.u32 1, %s827_s12   ;;  %p600_p4 = pnand %p556_p10, %p922_p5 }
  0x74   : > { %s462_s20 = scalar_lea.sflag [#allocation4], %s461_s18 }
  0x75   : > { %p601_p6 = pneg %p600_p4 }
  0x77   : > { %822 = dma.done.wait (%p601_p6), %s462_s20, 1024  }
  0x78   : > { %824 = vsyncadd (%p601_p6), %s462_s20, 4294966272  ;;  %s20_s17 = sadd.s32 1, %s847_s17   ;;  %s1107_s12 = smov %s831_s13 }
  0x79   : > { %p17_p8 = scmp.ge.s32.totalorder %s20_s17, 4   ;;  %s1108_s13 = smov %s835_s14 }
  0x7a   : > { %s1109_s14 = smov %s967_s25  ;;  %s1110_s15 = smov %s843_s16 }
  0x7b   : > { %s1111_s16 = smov %s1113_s9  ;;  %19 = sbr.rel (!%p17_p8) target bundleno = 7 (0x7), region = 85 }
  0x80   :  { %468 = vsyncpa [#allocation3], 1 }
  0x81   :  { %470 = vsyncpa [#allocation3 + $0x1], 1 }
  0x82   :  { %471 = vsyncpa [#allocation6], 1 }
  0x83   :  { %472 = vsyncpa [#allocation4], 1 }
  0x84   :  { %474 = vsyncpa [#allocation4 + $0x1], 1 }

</bundles_post_ra>
